<compile_context>
chip_gen: v6e
topology: v6e:2x2x1
jax: 0.10.0
libtpu: 0.0.40
codegen_flags: <defaults>
</compile_context>

<pallas_src>
import jax
import jax.numpy as jnp
from jax import lax
from jax.experimental import pallas as pl
from jax.experimental.pallas import tpu as pltpu

_NEG = -1e30


def attention_agg_kernel(c_ref, keys_ref, wk_ref, values_ref, index_ref,
                         acc_ref, l_ref, m_ref):
    """One node-tile of the online segment softmax + MXU scatter-add.

    acc_ref [1, V, Gp], l_ref [1, 1, Gp], m_ref [1, 1, Gp] are the resident
    per-split output blocks and double as the running flash-softmax state.
    """
    step = pl.program_id(1)                 # reduction position along N tiles
    tn = keys_ref.shape[0]
    gp = acc_ref.shape[2]

    @pl.when(step == 0)
    def _init():
        m_ref[...] = jnp.full_like(m_ref, _NEG)
        l_ref[...] = jnp.zeros_like(l_ref)
        acc_ref[...] = jnp.zeros_like(acc_ref)

    # --- scores: Linear(K+Q -> 1); the query term + bias are prefolded into
    # the single scalar c (SMEM).  keys may stream as bf16; compute in f32.
    keys = keys_ref[...].astype(jnp.float32)                       # [TN, K]
    s = (jnp.sum(keys * wk_ref[...], axis=-1, keepdims=True)
         + c_ref[0, 0])                                            # [TN, 1]

    # --- one-hot node -> graph mask, kept lane-dense at width g_pad ----------
    idx = index_ref[...]                                           # [TN, 1] i32
    seg = lax.broadcasted_iota(jnp.int32, (tn, gp), 1)             # [TN, Gp]
    mask = seg == idx                                              # [TN, Gp]
    s_g = jnp.where(mask, s, _NEG)                                 # [TN, Gp]

    # --- online (flash-style) segment softmax state update -------------------
    m_old = m_ref[0]                                               # [1, Gp]
    m_new = jnp.maximum(m_old, jnp.max(s_g, axis=0, keepdims=True))
    alpha = jnp.exp(m_old - m_new)                                 # [1, Gp]
    # Unmatched rows must be explicitly zeroed: exp(s_g - m_new) == 1 when a
    # graph column is still empty (both sides are the -1e30 sentinel).
    p = jnp.where(mask, jnp.exp(s_g - m_new), 0.0)                 # [TN, Gp]

    l_ref[0] = alpha * l_ref[0] + jnp.sum(p, axis=0, keepdims=True)
    m_ref[0] = m_new

    # --- weighted scatter_add partial on the MXU: contract the node axis -----
    # [TN, V] x [TN, Gp] -> [V, Gp]; no transpose materialized; f32 accumulate.
    partial = lax.dot_general(values_ref[...], p.astype(values_ref.dtype),
                              dimension_numbers=(((0,), (0,)), ((), ())),
                              preferred_element_type=jnp.float32)
    acc_ref[0] = acc_ref[0] * alpha + partial                      # [V, Gp]


def attention_aggregation(keys, values, query, index, size, score_w, score_b,
                          *, block_n=1024, num_splits=2,
                          stream_dtype=jnp.bfloat16):
    """keys [N,K], values [N,V], query [Q], index [N] int, size = #graphs G,
    score_w [1, K+Q] (torch Linear layout), score_b [1].  Returns [G, V] f32."""
    n, k = keys.shape
    v = values.shape[1]
    q = query.shape[0]
    g = int(size)
    g_pad = max(128, ((g + 127) // 128) * 128)        # lane-dense graph axis

    score_w = jnp.asarray(score_w, jnp.float32).reshape(1, k + q)

    # Split the Linear: node-dependent part (w_k) stays per-node; query part
    # and bias collapse to one scalar computed once here.  (The segment
    # softmax is shift-invariant, so c does not change the result; it is kept
    # for fidelity with the PyTorch module at negligible cost.)
    w_k = score_w[:, :k]                                           # [1, K]
    w_q = score_w[:, k:]                                           # [1, Q]
    c = (jnp.sum(w_q * jnp.asarray(query, jnp.float32).reshape(1, q))
         + jnp.asarray(score_b, jnp.float32).reshape(()))
    c2d = c.reshape(1, 1)

    # Cast streamed operands (HBM bytes are the binding resource).
    keys = keys.astype(stream_dtype)
    values = values.astype(stream_dtype)

    # Node-axis tiling: num_splits * tiles_per_split * bn rows total.  Padding
    # nodes get index == g_pad (out of range) -> all-false mask row -> exactly
    # zero contribution, no NaNs.
    per_split = -(-n // num_splits)
    bn = max(8, min(block_n, -(-per_split // 8) * 8))
    tiles_per_split = -(-per_split // bn)
    n_pad = num_splits * tiles_per_split * bn

    index = jnp.asarray(index, jnp.int32)
    if n_pad != n:
        pad = n_pad - n
        keys = jnp.pad(keys, ((0, pad), (0, 0)))
        values = jnp.pad(values, ((0, pad), (0, 0)))
        index = jnp.pad(index, ((0, pad),), constant_values=g_pad)
    idx2d = index.reshape(n_pad, 1)

    def node_map(c_i, i):
        return (c_i * tiles_per_split + i, 0)

    acc_p, l_p, m_p = pl.pallas_call(
        attention_agg_kernel,
        out_shape=(
            jax.ShapeDtypeStruct((num_splits, v, g_pad), jnp.float32),   # acc
            jax.ShapeDtypeStruct((num_splits, 1, g_pad), jnp.float32),   # l
            jax.ShapeDtypeStruct((num_splits, 1, g_pad), jnp.float32),   # m
        ),
        grid=(num_splits, tiles_per_split),
        in_specs=[
            pl.BlockSpec(memory_space=pltpu.MemorySpace.SMEM),           # c
            pl.BlockSpec((bn, k), node_map),                             # keys
            pl.BlockSpec((1, k), lambda c_i, i: (0, 0)),                 # w_k
            pl.BlockSpec((bn, v), node_map),                             # values
            pl.BlockSpec((bn, 1), node_map),                             # index
        ],
        out_specs=(
            pl.BlockSpec((1, v, g_pad), lambda c_i, i: (c_i, 0, 0)),
            pl.BlockSpec((1, 1, g_pad), lambda c_i, i: (c_i, 0, 0)),
            pl.BlockSpec((1, 1, g_pad), lambda c_i, i: (c_i, 0, 0)),
        ),
        compiler_params=pltpu.CompilerParams(
            # split axis shards across TensorCores on v7x; N tiles reduce.
            dimension_semantics=("parallel", "arbitrary"),
            vmem_limit_bytes=32 * 1024 * 1024,
        ),
    )(c2d, keys, w_k, values, idx2d)

    # Tiny fused epilogue: flash-style combine of the per-split partial
    # softmax states (degenerates to a plain normalize for num_splits == 1),
    # exact (l > 0)-masked reciprocal, [V,Gp] -> [G,V] transpose + slice.
    m_all = jnp.max(m_p, axis=0, keepdims=True)                    # [1, 1, Gp]
    a = jnp.exp(m_p - m_all)                                       # [S, 1, Gp]
    l_tot = jnp.sum(a * l_p, axis=0)                               # [1, Gp]
    acc_tot = jnp.sum(a * acc_p, axis=0)                           # [V, Gp]
    pos = l_tot > 0.0
    inv_l = jnp.where(pos, 1.0, 0.0) / jnp.where(pos, l_tot, 1.0)  # [1, Gp]
    return (acc_tot * inv_l).T[:g, :]                              # [G, V]


def _reference(keys, values, query, index, size, score_w, score_b):
    """Pure-JAX reference mirroring the PyTorch forward."""
    n = keys.shape[0]
    x = jnp.concatenate(
        [keys, jnp.broadcast_to(query[None, :], (n, query.shape[0]))], axis=-1)
    scores = (x @ score_w.T + score_b).squeeze(-1)                 # [N]
    seg_max = jax.ops.segment_max(scores, index, num_segments=size)
    ex = jnp.exp(scores - seg_max[index])
    seg_sum = jax.ops.segment_sum(ex, index, num_segments=size)
    weights = ex / (seg_sum[index] + 1e-16)
    return jax.ops.segment_sum(values * weights[:, None], index,
                               num_segments=size)


# TODO(synk): embedding_layer_num > 0 (MLP embedding of values) is not fused
# into the kernel; the configured forward uses Identity (embedding_layer_num=0).

if __name__ == "__main__":
    # Small, deterministic problem: 256 nodes, 8 graphs.
    N, KEY_DIM, QUERY_DIM, VALUE_DIM, G = 256, 16, 8, 32, 8

    key = jax.random.PRNGKey(0)
    k1, k2, k3, k4, k5, k6 = jax.random.split(key, 6)

    keys_in = jax.random.normal(k1, (N, KEY_DIM), dtype=jnp.float32)
    values_in = jax.random.normal(k2, (N, VALUE_DIM), dtype=jnp.float32)
    query_in = jax.random.normal(k3, (QUERY_DIM,), dtype=jnp.float32)
    index_in = jax.random.randint(k4, (N,), 0, G, dtype=jnp.int32)

    # score_module = single Linear(KEY_DIM+QUERY_DIM, 1) with bias.
    score_w = 0.1 * jax.random.normal(k5, (1, KEY_DIM + QUERY_DIM),
                                      dtype=jnp.float32)
    score_b = 0.1 * jax.random.normal(k6, (1,), dtype=jnp.float32)

    ref = _reference(keys_in, values_in, query_in, index_in, G,
                     score_w, score_b)

    # 1) Default perf config: bf16 streaming, 2-way core split, large tiles.
    out = attention_aggregation(keys_in, values_in, query_in, index_in, G,
                                score_w, score_b)
    out = jax.block_until_ready(out)
    assert out.shape == (G, VALUE_DIM)
    assert jnp.allclose(out, ref, atol=3e-2, rtol=3e-2), \
        f"bf16 max abs err {jnp.max(jnp.abs(out - ref))}"

    # 2) Exact f32 streaming, single split, exact reciprocal -> tight tolerance.
    out32 = attention_aggregation(keys_in, values_in, query_in, index_in, G,
                                  score_w, score_b,
                                  stream_dtype=jnp.float32, num_splits=1)
    out32 = jax.block_until_ready(out32)
    assert jnp.allclose(out32, ref, atol=1e-4, rtol=1e-4), \
        f"f32 max abs err {jnp.max(jnp.abs(out32 - ref))}"

    # 3) Exact f32 with small tiles: exercises the multi-step online softmax
    #    recurrence and the cross-split combine path together.
    out_mt = attention_aggregation(keys_in, values_in, query_in, index_in, G,
                                   score_w, score_b,
                                   stream_dtype=jnp.float32, num_splits=2,
                                   block_n=64)
    out_mt = jax.block_until_ready(out_mt)
    assert jnp.allclose(out_mt, ref, atol=1e-4, rtol=1e-4), \
        f"f32/tiled max abs err {jnp.max(jnp.abs(out_mt - ref))}"

    print("KERNEL_OK")
</pallas_src>

<mosaic_0001>
module attributes {stable_mosaic.version = 11 : i64} {
  func.func @attention_agg_kernel(%arg0: i32, %arg1: i32, %arg2: memref<1x1xf32, #tpu.memory_space<smem>>, %arg3: memref<128x16xbf16, #tpu.memory_space<vmem>>, %arg4: memref<1x16xf32, #tpu.memory_space<vmem>>, %arg5: memref<128x32xbf16, #tpu.memory_space<vmem>>, %arg6: memref<128x1xi32, #tpu.memory_space<vmem>>, %arg7: memref<1x32x128xf32, #tpu.memory_space<vmem>>, %arg8: memref<1x1x128xf32, #tpu.memory_space<vmem>>, %arg9: memref<1x1x128xf32, #tpu.memory_space<vmem>>) attributes {dimension_semantics = [#tpu.dimension_semantics<parallel>, #tpu.dimension_semantics<arbitrary>], iteration_bounds = array<i64: 2, 1>, scalar_prefetch = 0 : i64, scratch_operands = 0 : i64, tpu.core_type = #tpu.core_type<tc>, window_params = [{transform_indices = @transform_0, window_bounds = array<i64: 1, 1>}, {transform_indices = @transform_1, window_bounds = array<i64: 128, 16>}, {pipeline_mode = #tpu.pipeline_mode<synchronous>, transform_indices = @transform_2, window_bounds = array<i64: 1, 16>}, {transform_indices = @transform_3, window_bounds = array<i64: 128, 32>}, {transform_indices = @transform_4, window_bounds = array<i64: 128, 1>}, {transform_indices = @transform_5, window_bounds = array<i64: 1, 32, 128>}, {transform_indices = @transform_6, window_bounds = array<i64: 1, 1, 128>}, {transform_indices = @transform_7, window_bounds = array<i64: 1, 1, 128>}]} {
    %c0_i32 = arith.constant 0 : i32
    %0 = arith.cmpi eq, %arg1, %c0_i32 : i32
    %1 = arith.extui %0 : i1 to i32
    %c0_i32_0 = arith.constant 0 : i32
    %2 = arith.cmpi ne, %1, %c0_i32_0 : i32
    scf.if %2 {
      %cst_33 = arith.constant -1.000000e+30 : f32
      %56 = vector.broadcast %cst_33 : f32 to vector<1x1x128xf32>
      %c0_34 = arith.constant 0 : index
      %c0_35 = arith.constant 0 : index
      %c0_36 = arith.constant 0 : index
      %57 = vector.load %arg9[%c0_34, %c0_35, %c0_36] : memref<1x1x128xf32, #tpu.memory_space<vmem>>, vector<1x1x128xf32>
      tpu.vector_store %arg9[%c0_34, %c0_35, %c0_36], %56 {strides = array<i32>} : memref<1x1x128xf32, #tpu.memory_space<vmem>>, vector<1x1x128xf32>,
      %cst_37 = arith.constant 0.000000e+00 : f32
      %58 = vector.broadcast %cst_37 : f32 to vector<1x1x128xf32>
      %c0_38 = arith.constant 0 : index
      %c0_39 = arith.constant 0 : index
      %c0_40 = arith.constant 0 : index
      %59 = vector.load %arg8[%c0_38, %c0_39, %c0_40] : memref<1x1x128xf32, #tpu.memory_space<vmem>>, vector<1x1x128xf32>
      tpu.vector_store %arg8[%c0_38, %c0_39, %c0_40], %58 {strides = array<i32>} : memref<1x1x128xf32, #tpu.memory_space<vmem>>, vector<1x1x128xf32>,
      %cst_41 = arith.constant 0.000000e+00 : f32
      %60 = vector.broadcast %cst_41 : f32 to vector<1x32x128xf32>
      %c0_42 = arith.constant 0 : index
      %c0_43 = arith.constant 0 : index
      %c0_44 = arith.constant 0 : index
      %61 = vector.load %arg7[%c0_42, %c0_43, %c0_44] : memref<1x32x128xf32, #tpu.memory_space<vmem>>, vector<1x32x128xf32>
      tpu.vector_store %arg7[%c0_42, %c0_43, %c0_44], %60 {strides = array<i32>} : memref<1x32x128xf32, #tpu.memory_space<vmem>>, vector<1x32x128xf32>,
    } else {
    }
    %c0 = arith.constant 0 : index
    %c0_1 = arith.constant 0 : index
    %3 = vector.load %arg3[%c0, %c0_1] : memref<128x16xbf16, #tpu.memory_space<vmem>>, vector<128x16xbf16>
    %4 = arith.extf %3 : vector<128x16xbf16> to vector<128x16xf32>
    %c0_2 = arith.constant 0 : index
    %c0_3 = arith.constant 0 : index
    %5 = vector.load %arg4[%c0_2, %c0_3] : memref<1x16xf32, #tpu.memory_space<vmem>>, vector<1x16xf32>
    %6 = vector.broadcast %5 : vector<1x16xf32> to vector<128x16xf32>
    %7 = arith.mulf %4, %6 : vector<128x16xf32>
    %cst = arith.constant dense<0.000000e+00> : vector<128xf32>
    %8 = vector.multi_reduction <add>, %7, %cst [1] : vector<128x16xf32> to vector<128xf32>
    %9 = vector.shape_cast %8 : vector<128xf32> to vector<128x1xf32>
    %c0_4 = arith.constant 0 : index
    %c0_5 = arith.constant 0 : index
    %10 = memref.load %arg2[%c0_4, %c0_5] : memref<1x1xf32, #tpu.memory_space<smem>>
    %11 = vector.broadcast %10 : f32 to vector<128x1xf32>
    %12 = arith.addf %9, %11 : vector<128x1xf32>
    %c0_6 = arith.constant 0 : index
    %c0_7 = arith.constant 0 : index
    %13 = vector.load %arg6[%c0_6, %c0_7] : memref<128x1xi32, #tpu.memory_space<vmem>>, vector<128x1xi32>
    %14 = tpu.iota {dimensions = array<i32: 1>} : vector<128x128xi32>
    %15 = vector.broadcast %13 : vector<128x1xi32> to vector<128x128xi32>
    %16 = arith.cmpi eq, %14, %15 : vector<128x128xi32>
    %cst_8 = arith.constant -1.000000e+30 : f32
    %17 = vector.shape_cast %12 : vector<128x1xf32> to vector<128x1xf32>
    %18 = vector.broadcast %17 : vector<128x1xf32> to vector<128x128xf32>
    %19 = vector.broadcast %cst_8 : f32 to vector<128x128xf32>
    %20 = arith.select %16, %18, %19 : vector<128x128xi1>, vector<128x128xf32>
    %c0_9 = arith.constant 0 : index
    %c0_10 = arith.constant 0 : index
    %c0_11 = arith.constant 0 : index
    %21 = vector.load %arg9[%c0_9, %c0_10, %c0_11] : memref<1x1x128xf32, #tpu.memory_space<vmem>>, vector<1x1x128xf32>
    %22 = vector.shape_cast %21 : vector<1x1x128xf32> to vector<1x128xf32>
    %cst_12 = arith.constant dense<0xFF800000> : vector<128xf32>
    %23 = vector.multi_reduction <maximumf>, %20, %cst_12 [0] : vector<128x128xf32> to vector<128xf32>
    %24 = vector.shape_cast %23 : vector<128xf32> to vector<1x128xf32>
    %25 = arith.maximumf %22, %24 : vector<1x128xf32>
    %26 = arith.subf %22, %25 : vector<1x128xf32>
    %27 = math.exp %26 : vector<1x128xf32>
    %28 = vector.broadcast %25 : vector<1x128xf32> to vector<128x128xf32>
    %29 = arith.subf %20, %28 : vector<128x128xf32>
    %30 = math.exp %29 : vector<128x128xf32>
    %cst_13 = arith.constant 0.000000e+00 : f32
    %31 = vector.broadcast %cst_13 : f32 to vector<128x128xf32>
    %32 = arith.select %16, %30, %31 : vector<128x128xi1>, vector<128x128xf32>
    %c0_14 = arith.constant 0 : index
    %c0_15 = arith.constant 0 : index
    %c0_16 = arith.constant 0 : index
    %33 = vector.load %arg8[%c0_14, %c0_15, %c0_16] : memref<1x1x128xf32, #tpu.memory_space<vmem>>, vector<1x1x128xf32>
    %34 = vector.shape_cast %33 : vector<1x1x128xf32> to vector<1x128xf32>
    %35 = arith.mulf %27, %34 : vector<1x128xf32>
    %cst_17 = arith.constant dense<0.000000e+00> : vector<128xf32>
    %36 = vector.multi_reduction <add>, %32, %cst_17 [0] : vector<128x128xf32> to vector<128xf32>
    %37 = vector.shape_cast %36 : vector<128xf32> to vector<1x128xf32>
    %38 = arith.addf %35, %37 : vector<1x128xf32>
    %c0_18 = arith.constant 0 : index
    %c0_19 = arith.constant 0 : index
    %c0_20 = arith.constant 0 : index
    %39 = vector.load %arg8[%c0_18, %c0_19, %c0_20] : memref<1x1x128xf32, #tpu.memory_space<vmem>>, vector<1x1x128xf32>
    %40 = vector.shape_cast %39 : vector<1x1x128xf32> to vector<1x128xf32>
    %41 = vector.shape_cast %38 : vector<1x128xf32> to vector<1x1x128xf32>
    tpu.vector_store %arg8[%c0_18, %c0_19, %c0_20], %41 {strides = array<i32>} : memref<1x1x128xf32, #tpu.memory_space<vmem>>, vector<1x1x128xf32>,
    %c0_21 = arith.constant 0 : index
    %c0_22 = arith.constant 0 : index
    %c0_23 = arith.constant 0 : index
    %42 = vector.load %arg9[%c0_21, %c0_22, %c0_23] : memref<1x1x128xf32, #tpu.memory_space<vmem>>, vector<1x1x128xf32>
    %43 = vector.shape_cast %42 : vector<1x1x128xf32> to vector<1x128xf32>
    %44 = vector.shape_cast %25 : vector<1x128xf32> to vector<1x1x128xf32>
    tpu.vector_store %arg9[%c0_21, %c0_22, %c0_23], %44 {strides = array<i32>} : memref<1x1x128xf32, #tpu.memory_space<vmem>>, vector<1x1x128xf32>,
    %c0_24 = arith.constant 0 : index
    %c0_25 = arith.constant 0 : index
    %45 = vector.load %arg5[%c0_24, %c0_25] : memref<128x32xbf16, #tpu.memory_space<vmem>>, vector<128x32xbf16>
    %46 = arith.truncf %32 : vector<128x128xf32> to vector<128x128xbf16>
    %cst_26 = arith.constant dense<0.000000e+00> : vector<32x128xf32>
    %47 = tpu.matmul %45, %46, %cst_26 {dimension_numbers = #tpu.dot_dimension_numbers<[0], [0], [1], [1], [0, 1, 1, 1], [], []>} : vector<128x32xbf16>, vector<128x128xbf16>, vector<32x128xf32> -> vector<32x128xf32>
    %c0_27 = arith.constant 0 : index
    %c0_28 = arith.constant 0 : index
    %c0_29 = arith.constant 0 : index
    %48 = vector.load %arg7[%c0_27, %c0_28, %c0_29] : memref<1x32x128xf32, #tpu.memory_space<vmem>>, vector<1x32x128xf32>
    %49 = vector.shape_cast %48 : vector<1x32x128xf32> to vector<32x128xf32>
    %50 = vector.broadcast %27 : vector<1x128xf32> to vector<32x128xf32>
    %51 = arith.mulf %49, %50 : vector<32x128xf32>
    %52 = arith.addf %51, %47 : vector<32x128xf32>
    %c0_30 = arith.constant 0 : index
    %c0_31 = arith.constant 0 : index
    %c0_32 = arith.constant 0 : index
    %53 = vector.load %arg7[%c0_30, %c0_31, %c0_32] : memref<1x32x128xf32, #tpu.memory_space<vmem>>, vector<1x32x128xf32>
    %54 = vector.shape_cast %53 : vector<1x32x128xf32> to vector<32x128xf32>
    %55 = vector.shape_cast %52 : vector<32x128xf32> to vector<1x32x128xf32>
    tpu.vector_store %arg7[%c0_30, %c0_31, %c0_32], %55 {strides = array<i32>} : memref<1x32x128xf32, #tpu.memory_space<vmem>>, vector<1x32x128xf32>,
    return
  }
  func.func @transform_0(%arg0: i32, %arg1: i32) -> (i32, i32) {
    %c0_i32 = arith.constant 0 : i32
    %c0_i32_0 = arith.constant 0 : i32
    %c0_i32_1 = arith.constant 0 : i32
    return %c0_i32, %c0_i32_0 : i32, i32
  }
  func.func @transform_1(%arg0: i32, %arg1: i32) -> (i32, i32) {
    %c1_i32 = arith.constant 1 : i32
    %0 = arith.muli %arg0, %c1_i32 : i32
    %1 = arith.addi %0, %arg1 : i32
    %c0_i32 = arith.constant 0 : i32
    %c0_i32_0 = arith.constant 0 : i32
    return %1, %c0_i32 : i32, i32
  }
  func.func @transform_2(%arg0: i32, %arg1: i32) -> (i32, i32) {
    %c0_i32 = arith.constant 0 : i32
    %c0_i32_0 = arith.constant 0 : i32
    %c0_i32_1 = arith.constant 0 : i32
    return %c0_i32, %c0_i32_0 : i32, i32
  }
  func.func @transform_3(%arg0: i32, %arg1: i32) -> (i32, i32) {
    %c1_i32 = arith.constant 1 : i32
    %0 = arith.muli %arg0, %c1_i32 : i32
    %1 = arith.addi %0, %arg1 : i32
    %c0_i32 = arith.constant 0 : i32
    %c0_i32_0 = arith.constant 0 : i32
    return %1, %c0_i32 : i32, i32
  }
  func.func @transform_4(%arg0: i32, %arg1: i32) -> (i32, i32) {
    %c1_i32 = arith.constant 1 : i32
    %0 = arith.muli %arg0, %c1_i32 : i32
    %1 = arith.addi %0, %arg1 : i32
    %c0_i32 = arith.constant 0 : i32
    %c0_i32_0 = arith.constant 0 : i32
    return %1, %c0_i32 : i32, i32
  }
  func.func @transform_5(%arg0: i32, %arg1: i32) -> (i32, i32, i32) {
    %c0_i32 = arith.constant 0 : i32
    %c0_i32_0 = arith.constant 0 : i32
    %c0_i32_1 = arith.constant 0 : i32
    return %arg0, %c0_i32, %c0_i32_0 : i32, i32, i32
  }
  func.func @transform_6(%arg0: i32, %arg1: i32) -> (i32, i32, i32) {
    %c0_i32 = arith.constant 0 : i32
    %c0_i32_0 = arith.constant 0 : i32
    %c0_i32_1 = arith.constant 0 : i32
    return %arg0, %c0_i32, %c0_i32_0 : i32, i32, i32
  }
  func.func @transform_7(%arg0: i32, %arg1: i32) -> (i32, i32, i32) {
    %c0_i32 = arith.constant 0 : i32
    %c0_i32_0 = arith.constant 0 : i32
    %c0_i32_1 = arith.constant 0 : i32
    return %arg0, %c0_i32, %c0_i32_0 : i32, i32, i32
  }
}

</mosaic_0001>

<bundles_post_ra>
// kernel: tpu_custom_call.1
= control target key start
LH: loop header
LB: loop body
LE: loop exit
PB: predicated region body
PF: predicated region fallthrough
CT: control target
= control target key end

     0   :  { %s2071_s0 = inlined_call_operand.<no memory space> [shape: f32[1,1], index: 0, kind: input, shape index: {}]   ;;  %s2072_s1 = inlined_call_operand.vmem [shape: bf16[256,16], index: 1, kind: input, shape index: {}]   ;;  %s2073_s2 = inlined_call_operand.vmem [shape: f32[1,16], index: 2, kind: input, shape index: {}]   ;;  %s2074_s3 = inlined_call_operand.vmem [shape: bf16[256,32], index: 3, kind: input, shape index: {}]   ;;  %s2075_s4 = inlined_call_operand.vmem [shape: s32[256,1], index: 4, kind: input, shape index: {}]   ;;  %s2076_s5 = inlined_call_operand.hbm [shape: f32[2,32,128], index: 5, kind: output, shape index: {0}]   ;;  %s2077_s6 = inlined_call_operand.hbm [shape: f32[2,1,128], index: 6, kind: output, shape index: {1}]   ;;  %s2078_s7 = inlined_call_operand.hbm [shape: f32[2,1,128], index: 7, kind: output, shape index: {2}]  }
   0x1   :  { %2082 = sst [smem:[#allocation10_spill]] %s2072_s1 }
   0x2   :  { %2083 = sst [smem:[#allocation11_spill]] %s2073_s2 }
   0x3   :  { %13 = sst [smem:[#allocation2]] %s2071_s0 }
   0x4   :  { %14 = vsyncpa [#allocation4], 0 }
   0x5   :  { %16 = vsyncpa [#allocation4 + $0x1], 0 }
   0x6   :  { %17 = vsyncpa [#allocation6], 0 }
   0x7   :  { %19 = vsyncpa [#allocation6 + $0x1], 0  ;;  %s1501_s26 = smov 0   ;;  %s1503_s27 = smov 0  }
   0x8   :  { %s1505_s28 = smov 0   ;;  %s1507_s29 = smov 0  }
   0x9   :  { %s1509_s30 = smov 0   ;;  %s1511_s8 = smov 0  }
   0xa LB: > { %s1080_s0 = sadd.s32 4294967295, %s1448_s8   ;;  %s2081_s9 = sadd.s32 4294967294, %s1448_s8   ;;  %s1448_s8 = sphi %s1511_s8, %s25_s8   ;;  %s1444_s30 = sphi %s1509_s30, %s2097_s30   ;;  %s1440_s29 = sphi %s1507_s29, %s2096_s29   ;;  %s1436_s28 = sphi %s1505_s28, %s2095_s28   ;;  %s1432_s27 = sphi %s1503_s27, %s2094_s27   ;;  %s1428_s26 = sphi %s1501_s26, %s2093_s26  }
   0xb   : > { %s37_s10 = sadd.s32 1, %s1444_s30  ;;  %s170_s11 = sadd.s32 1, %s1436_s28 }
   0xc   : > { %p39_p0 = scmp.ge.s32.totalorder %s37_s10, 2  ;;  %p180_p1 = scmp.ne.s32.totalorder %s1436_s28, %s1432_s27 }
   0xd   : > { %p181_p2 = scmp.eq.s32.totalorder %s1080_s0, 1  ;;  %p186_p3 = scmp.ne.s32.totalorder %s1432_s27, %s1428_s26 }
   0xe   : > { %s2099_s10 = smov (%p39_p0, %s37_s10), 0  ;;  %p187_p5 = scmp.eq.s32.totalorder %s2081_s9, 1 }
   0xf   : > { %p1543_p4 = por %p181_p2, %p180_p1  ;;  %s167_s13 = ssub.s32 %s1444_s30, %s2099_s10 }
  0x10   : > { %p1084_p6 = scmp.ge.s32.totalorder %s1448_s8, 1  ;;  %p168_p7 = scmp.eq.s32.totalorder %s167_s13, 0 }
  0x11   : > { %p1552_p8 = por %p187_p5, %p186_p3  ;;  %p296_p9 = scmp.lt.s32.totalorder %s1448_s8, 3 }
  0x12   : > { %s1558_s15 = scalar_select %p168_p7, %s1436_s28, %s170_s11  }
  0x13   : > { %p297_p10 = pnand %p1084_p6, %p296_p9 }
  0x14   : > { %s1561_s16 = sshll.u32 (!%p297_p10), %s1440_s29, 4  ;;  %s2086_s1 = sld [smem:[#allocation10_spill]] (!%p297_p10) }
  0x15   : > { %300 = sbr.rel (%p297_p10) target bundleno = 551 (0x227), region = 40  ;;  %p351_p11 = scmp.lt.s32.totalorder (!%p297_p10), %s1561_s16, 31 }
  0x16   : > { %s2087_s2 = sld [smem:[#allocation11_spill]] (!%p297_p10)  ;;  %s1973_s24 = sand.u32 (!%p297_p10), 1, %s1080_s0  }
  0x17   : > { %s488_s23 = sld [smem:[#allocation2]] (!%p297_p10) }
  0x1a   : > { %v1450_v0 = vmov 0   ;;  %s1565_s17 = scalar_select %p351_p11, %s1561_s16, 31  ;;  %vm439_vm0 = vcmask 130048  }
  0x1b   : > { %1273 = vset.pattern.permute.xlu1 %v1450_v0  ;;  %1272 = vset.pattern.permute.xlu0 %v1450_v0 }
  0x1c   : > { %s1087_s18 = sshll.u32 %s1565_s17, 2  ;;  %v1576_v1 = vld [vmem:[%s2087_s2] ss:$0 sm:$0xff]  ;;  %s1091_s13 = sshll.u32 %s1565_s17, 3 }
  0x1d   : > { %s1571_s21 = scalar_lea.vmem %s2086_s1, %s1087_s18  ;;  %s1591_s11 = scalar_lea.vmem %s2074_s3, %s1087_s18 }
  0x1e   : > { %v1165_v2 = vld [vmem:[%s1571_s21 + $0x8] sm:$0xff]   ;;  %v1134_v3 = vld [vmem:[%s1571_s21] sm:$0xff]   ;;  %v1166_v4 = vld [vmem:[%s1571_s21 + $0x10] sm:$0xff]   ;;  %s1627_s20 = scalar_lea.vmem %s2075_s4, %s1091_s13  ;;  %s1646_s17 = sand.u32 1, %s1432_s27  }
  0x1f   : > { %v1139_v5 = vunpack.c.l.bf16 %v1165_v2  ;;  %v1135_v6 = vunpack.c.l.bf16 %v1134_v3  ;;  %v1140_v7 = vunpack.c.h.bf16 %v1165_v2  ;;  %v1136_v8 = vunpack.c.h.bf16 %v1134_v3  ;;  %v1167_v15 = vld [vmem:[%s1571_s21 + $0x18] sm:$0xff]   ;;  %v1168_v24 = vld [vmem:[%s1571_s21 + $0x20] sm:$0xff]   ;;  %v1169_v31 = vld [vmem:[%s1571_s21 + $0x28] sm:$0xff]   ;;  %s1657_s22 = scalar_lea.vmem [#allocation5], %s1646_s17  ;;  %s921_s18 = scalar_lea.hbm %s2077_s6, %s1561_s16 }
  0x20   : > { %v1144_v9 = vunpack.c.h.bf16 %v1166_v4  ;;  %v1143_v10 = vunpack.c.l.bf16 %v1166_v4  ;;  %v1148_v18 = vunpack.c.h.bf16 %v1167_v15  ;;  %v1147_v19 = vunpack.c.l.bf16 %v1167_v15  ;;  %v1170_v38 = vld [vmem:[%s1571_s21 + $0x30] sm:$0xff]   ;;  %v1171_v45 = vld [vmem:[%s1571_s21 + $0x38] sm:$0xff]   ;;  %v507_v58 = vld [vmem:[%s1627_s20 + $0x8] sm:$0xff]  ;;  %s1649_s21 = scalar_lea.vmem [#allocation7], %s1646_s17  ;;  %s923_s25 = sshll.u32 %s1657_s22, 4  ;;  %s924_s25 = int_to_ptr.vmem [resolvable:$true] %s923_s25 }
  0x21   : > { %v425_v11 = vmul.f32 %v1139_v5, %v1576_v1  ;;  %v423_v12 = vmul.f32 %v1135_v6, %v1576_v1  ;;  %v426_v13 = vmul.f32 %v1140_v7, %v1576_v1  ;;  %v424_v14 = vmul.f32 %v1136_v8, %v1576_v1  ;;  %v508_v59 = vld [vmem:[%s1627_s20 + $0x10] sm:$0xff]  ;;  %v506_v60 = vld [vmem:[%s1627_s20] sm:$0xff]  ;;  %v509_v61 = vld [vmem:[%s1627_s20 + $0x18] sm:$0xff] }
  0x22   : > { %v428_v22 = vmul.f32 %v1144_v9, %v1576_v1  ;;  %v427_v23 = vmul.f32 %v1143_v10, %v1576_v1  ;;  %v430_v25 = vmul.f32 %v1148_v18, %v1576_v1  ;;  %v429_v26 = vmul.f32 %v1147_v19, %v1576_v1  ;;  %v515_v62 = vld [vmem:[%s1627_s20 + $0x48] sm:$0xff]  ;;  %v510_v63 = vld [vmem:[%s1627_s20 + $0x20] sm:$0xff]  ;;  %v517_v0 = vld [vmem:[%s1627_s20 + $0x58] sm:$0xff] }
  0x23   : > { %v446_v16 = vsel %vm439_vm0, %v425_v11, 0.0  ;;  %v440_v17 = vsel %vm439_vm0, %v423_v12, 0.0  ;;  %v449_v20 = vsel %vm439_vm0, %v426_v13, 0.0  ;;  %v443_v21 = vsel %vm439_vm0, %v424_v14, 0.0  ;;  %v519_v2 = vld [vmem:[%s1627_s20 + $0x68] sm:$0xff]  ;;  %v512_v3 = vld [vmem:[%s1627_s20 + $0x30] sm:$0xff] }
  0x24   : > { %447 = vadd.xlane.f32.xlu1 %v446_v16  ;;  %441 = vadd.xlane.f32.xlu0 %v440_v17  ;;  %v455_v27 = vsel %vm439_vm0, %v428_v22, 0.0  ;;  %v452_v28 = vsel %vm439_vm0, %v427_v23, 0.0  ;;  %v1152_v29 = vunpack.c.h.bf16 %v1168_v24  ;;  %v1151_v30 = vunpack.c.l.bf16 %v1168_v24  ;;  %v521_v4 = vld [vmem:[%s1627_s20 + $0x78] sm:$0xff]  ;;  %v514_v6 = vld [vmem:[%s1627_s20 + $0x40] sm:$0xff]  ;;  %v516_v7 = vld [vmem:[%s1627_s20 + $0x50] sm:$0xff] }
  0x25   : > { %v461_v32 = vsel %vm439_vm0, %v430_v25, 0.0  ;;  %v458_v33 = vsel %vm439_vm0, %v429_v26, 0.0  ;;  %v1156_v36 = vunpack.c.h.bf16 %v1169_v31  ;;  %v1155_v37 = vunpack.c.l.bf16 %v1169_v31  ;;  %v513_v5 = vld [vmem:[%s1627_s20 + $0x38] sm:$0xff]  ;;  %v518_v8 = vld [vmem:[%s1627_s20 + $0x60] sm:$0xff]  ;;  %v520_v9 = vld [vmem:[%s1627_s20 + $0x70] sm:$0xff] }
  0x26   : > { %v432_v34 = vmul.f32 %v1152_v29, %v1576_v1  ;;  %v431_v35 = vmul.f32 %v1151_v30, %v1576_v1  ;;  %v1160_v39 = vunpack.c.h.bf16 %v1170_v38  ;;  %v1159_v40 = vunpack.c.l.bf16 %v1170_v38  ;;  %v1274_v11 = vld [vmem:[%s1591_s11] sm:$0xff]   ;;  %v1275_v12 = vld [vmem:[%s1591_s11 + $0x8] sm:$0xff]   ;;  %v1276_v13 = vld [vmem:[%s1591_s11 + $0x10] sm:$0xff]  }
  0x27   : > { %v434_v43 = vmul.f32 %v1156_v36, %v1576_v1  ;;  %v433_v44 = vmul.f32 %v1155_v37, %v1576_v1  ;;  %v1164_v46 = vunpack.c.h.bf16 %v1171_v45  ;;  %v1163_v47 = vunpack.c.l.bf16 %v1171_v45  ;;  %v1277_v14 = vld [vmem:[%s1591_s11 + $0x18] sm:$0xff]   ;;  %v1278_v16 = vld [vmem:[%s1591_s11 + $0x20] sm:$0xff]   ;;  %v1279_v17 = vld [vmem:[%s1591_s11 + $0x28] sm:$0xff]  }
  0x28   : > { %450 = vadd.xlane.f32.xlu1 %v449_v20  ;;  %444 = vadd.xlane.f32.xlu0 %v443_v21  ;;  %v467_v41 = vsel %vm439_vm0, %v432_v34, 0.0  ;;  %v464_v42 = vsel %vm439_vm0, %v431_v35, 0.0  ;;  %v436_v50 = vmul.f32 %v1160_v39, %v1576_v1  ;;  %v435_v51 = vmul.f32 %v1159_v40, %v1576_v1  ;;  %v1280_v20 = vld [vmem:[%s1591_s11 + $0x30] sm:$0xff]   ;;  %v1281_v23 = vld [vmem:[%s1591_s11 + $0x38] sm:$0xff]  }
  0x29   : > { %v473_v48 = vsel %vm439_vm0, %v434_v43, 0.0  ;;  %v470_v49 = vsel %vm439_vm0, %v433_v44, 0.0  ;;  %v438_v54 = vmul.f32 %v1164_v46, %v1576_v1  ;;  %v437_v55 = vmul.f32 %v1163_v47, %v1576_v1  ;;  %v511_v1 = vld [vmem:[%s1627_s20 + $0x28] sm:$0xff]  ;;  %s1316_s20 = scalar_lea.vmem %s924_s25, 16 }
  0x2a   : > { %v479_v52 = vsel %vm439_vm0, %v436_v50, 0.0  ;;  %v476_v53 = vsel %vm439_vm0, %v435_v51, 0.0  ;;  %v1451_v10 = vmov -1e+30   ;;  %v1452_v15 = vmov 0.0   ;;  %p1317_p12 = scmp.ne.s32.totalorder %s924_s25, %s1316_s20 }
  0x2b   : > { %v485_v56 = vsel %vm439_vm0, %v438_v54, 0.0  ;;  %v482_v57 = vsel %vm439_vm0, %v437_v55, 0.0  ;;  %378 = vst [vmem:[%s1649_s21] sm:$0x1] %v1451_v10  ;;  %379 = vst [vmem:[%s1657_s22] sm:$0x1] %v1452_v15  ;;  %v522_v44 = vlaneseq  ;;  %v489_v47 = vstv %s488_s23  ;;  %s1453_s23 = smov [#allocation5]  }
  0x2c   : > { %456 = vadd.xlane.f32.xlu1 %v455_v27  ;;  %453 = vadd.xlane.f32.xlu0 %v452_v28  ;;  %p1318_p13 = pnand %p1317_p12, %p1543_p4  ;;  %s1320_s9 = sshll.u32 %s1453_s23, 4  ;;  %s1321_s9 = int_to_ptr.vmem [resolvable:$false] %s1320_s9 }
  0x2d   : > { %s1322_s1 = scalar_lea.vmem %s1321_s9, 32  ;;  %p1323_p1 = scmp.lt.s32.totalorder %s924_s25, %s1321_s9 }
  0x2e   : > { %p1319_p0 = pneg %p1318_p13  ;;  %p1324_p2 = scmp.lt.s32.totalorder %s1322_s1, %s1316_s20 }
  0x30   : > { %462 = vadd.xlane.f32.xlu1 %v461_v32  ;;  %459 = vadd.xlane.f32.xlu0 %v458_v33  ;;  %p1325_p3 = por %p1324_p2, %p1323_p1 }
  0x32   : > { %p1326_p5 = pnand %p1325_p3, %p1319_p0 }
  0x34   : > { %468 = vadd.xlane.f32.xlu1 %v467_v41  ;;  %465 = vadd.xlane.f32.xlu0 %v464_v42 }
  0x38   : > { %474 = vadd.xlane.f32.xlu1 %v473_v48  ;;  %471 = vadd.xlane.f32.xlu0 %v470_v49  ;;  %v1691_v48 = vand.u32 127, %v522_v44 }
  0x3c   : > { %480 = vadd.xlane.f32.xlu1 %v479_v52  ;;  %477 = vadd.xlane.f32.xlu0 %v476_v53 }
  0x40   : > { %486 = vadd.xlane.f32.xlu1 %v485_v56  ;;  %483 = vadd.xlane.f32.xlu0 %v482_v57 }
  0x51   : > { %528 = vperm.xlu1 %1273, %v507_v58  }
  0x55   : > { %531 = vperm.xlu1 %1273, %v508_v59  }
  0x56   : > { %525 = vperm.xlu0 %1272, %v506_v60  }
  0x59   : > { %534 = vperm.xlu1 %1273, %v509_v61  }
  0x5a   : > { %552 = vperm.xlu0 %1272, %v515_v62  }
  0x5d   : > { %537 = vperm.xlu1 %1273, %v510_v63  }
  0x5e   : > { %558 = vperm.xlu0 %1272, %v517_v0  }
  0x61   : > { %540 = vperm.xlu1 %1273, %v511_v1  }
  0x62   : > { %564 = vperm.xlu0 %1272, %v519_v2  }
  0x65   : > { %543 = vperm.xlu1 %1273, %v512_v3  }
  0x66   : > { %570 = vperm.xlu0 %1272, %v521_v4  }
  0x69   : > { %546 = vperm.xlu1 %1273, %v513_v5  }
  0x6d   : > { %549 = vperm.xlu1 %1273, %v514_v6  }
  0x71   : > { %555 = vperm.xlu1 %1273, %v516_v7  }
  0x75   : > { %561 = vperm.xlu1 %1273, %v518_v8  }
  0x79   : > { %567 = vperm.xlu1 %1273, %v520_v9  }
  0x9c   : > { %798 = vxpose.xlu1.c.b16.start [1/8] (narrow) %v1274_v11, 32 }
  0xa0   : > { %799 = vxpose.xlu1.c.b16.cont [2/8] (narrow) %v1275_v12, 32 }
  0xa4   : > { %800 = vxpose.xlu1.c.b16.cont [3/8] (narrow) %v1276_v13, 32 }
  0xa8   : > { %801 = vxpose.xlu1.c.b16.cont [4/8] (narrow) %v1277_v14, 32 }
  0xac   : > { %802 = vxpose.xlu1.c.b16.cont [5/8] (narrow) %v1278_v16, 32 }
  0xad   : > { %v448_v18 = vpop.xlane.xlu1 %447  ;;  %v442_v19 = vpop.xlane.xlu0 %441 }
  0xae   : > { %v492_v49 = vadd.f32 %v489_v47, %v448_v18  ;;  %v490_v51 = vadd.f32 %v489_v47, %v442_v19 }
  0xb0   : > { %803 = vxpose.xlu1.c.b16.cont [6/8] (narrow) %v1279_v17, 32 }
  0xb1   : > { %v451_v21 = vpop.xlane.xlu1 %450  ;;  %v445_v22 = vpop.xlane.xlu0 %444 }
  0xb2   : > { %v493_v50 = vadd.f32 %v489_v47, %v451_v21  ;;  %v491_v54 = vadd.f32 %v489_v47, %v445_v22 }
  0xb4   : > { %804 = vxpose.xlu1.c.b16.cont [7/8] (narrow) %v1280_v20, 32 }
  0xb5   : > { %v457_v24 = vpop.xlane.xlu1 %456  ;;  %v454_v25 = vpop.xlane.xlu0 %453 }
  0xb6   : > { %v495_v53 = vadd.f32 %v489_v47, %v457_v24  ;;  %v494_v56 = vadd.f32 %v489_v47, %v454_v25 }
  0xb8   : > { %805 = vxpose.xlu1.c.b16.end [8/8] (narrow) %v1281_v23, 32 }
  0xb9   : > { %v463_v26 = vpop.xlane.xlu1 %462  ;;  %v460_v27 = vpop.xlane.xlu0 %459 }
  0xba   : > { %v497_v55 = vadd.f32 %v489_v47, %v463_v26  ;;  %v496_v58 = vadd.f32 %v489_v47, %v460_v27 }
  0xbd   : > { %v469_v28 = vpop.xlane.xlu1 %468  ;;  %v466_v30 = vpop.xlane.xlu0 %465 }
  0xbe   : > { %v499_v57 = vadd.f32 %v489_v47, %v469_v28  ;;  %v498_v60 = vadd.f32 %v489_v47, %v466_v30 }
  0xc1   : > { %v475_v29 = vpop.xlane.xlu1 %474  ;;  %v472_v32 = vpop.xlane.xlu0 %471 }
  0xc2   : > { %v501_v62 = vadd.f32 %v489_v47, %v475_v29  ;;  %v500_v5 = vadd.f32 %v489_v47, %v472_v32 }
  0xc5   : > { %v1664_v31 = vpop.xlane.xlu1 %480  ;;  %v478_v34 = vpop.xlane.xlu0 %477 }
  0xc6   : > { %v502_v8 = vadd.f32 %v489_v47, %v478_v34  ;;  %v503_v23 = vadd.f32 %v489_v47, %v1664_v31 }
  0xc9   : > { %v1666_v33 = vpop.xlane.xlu1 %486  ;;  %v1672_v37 = vpop.xlane.xlu0 %483 }
  0xca   : > { %v505_v24 = vadd.f32 %v489_v47, %v1666_v33  ;;  %v504_v25 = vadd.f32 %v489_v47, %v1672_v37 }
  0xcd   : > { %v1668_v35 = vpop.permute.xlu1 %528 }
  0xce   : > { %vm2079_vm2 = vcmp.eq.s32.totalorder %v1691_v48, %v1668_v35 }
  0xcf   : > { %v1715_v63 = vsel %vm2079_vm2, %v491_v54, -1e+30 }
  0xd1   : > { %v1670_v36 = vpop.permute.xlu1 %531  ;;  %v1676_v39 = vpop.permute.xlu0 %525 }
  0xd2   : > { %vm574_vm6 = vcmp.eq.s32.totalorder %v1691_v48, %v1670_v36  ;;  %vm2080_vm7 = vcmp.eq.s32.totalorder %v1691_v48, %v1676_v39 }
  0xd3   : > { %v1751_v6 = vsel %vm574_vm6, %v492_v49, -1e+30  ;;  %v588_v9 = vsel %vm2080_vm7, %v490_v51, -1e+30 }
  0xd5   : > { %v1674_v38 = vpop.permute.xlu1 %534  ;;  %v1682_v42 = vpop.permute.xlu0 %552 }
  0xd6   : > { %vm575_vm4 = vcmp.eq.s32.totalorder %v1691_v48, %v1674_v38  ;;  %vm581_vm8 = vcmp.eq.s32.totalorder %v1691_v48, %v1682_v42 }
  0xd7   : > { %v1737_v2 = vsel %vm575_vm4, %v493_v50, -1e+30  ;;  %v1777_v14 = vsel %vm581_vm8, %v499_v57, -1e+30 }
  0xd9   : > { %v1678_v40 = vpop.permute.xlu1 %537  ;;  %v1686_v45 = vpop.permute.xlu0 %558 }
  0xda   : > { %vm576_vm5 = vcmp.eq.s32.totalorder %v1691_v48, %v1678_v40  ;;  %vm583_vm11 = vcmp.eq.s32.totalorder %v1691_v48, %v1686_v45 }
  0xdb   : > { %v1742_v3 = vsel %vm576_vm5, %v494_v56, -1e+30  ;;  %v1783_v16 = vsel %vm583_vm11, %v501_v62, -1e+30 }
  0xdc   : > { %v605_v15 = vmax.f32 %v588_v9, %v1742_v3 }
  0xdd   : > { %v1680_v41 = vpop.permute.xlu1 %540  ;;  %v1701_v59 = vpop.permute.xlu0 %564 }
  0xde   : > { %vm577_vm1 = vcmp.eq.s32.totalorder %v1691_v48, %v1680_v41  ;;  %vm585_vm14 = vcmp.eq.s32.totalorder %v1691_v48, %v1701_v59  ;;  %v700_v41 = vld [vmem:[%s1657_s22] sm:$0x1] }
  0xdf   : > { %v1710_v61 = vsel %vm577_vm1, %v495_v53, -1e+30  ;;  %v1818_v29 = vsel %vm585_vm14, %v503_v23, -1e+30 }
  0xe0   : > { %v606_v4 = vmax.f32 %v1715_v63, %v1710_v61 }
  0xe1   : > { %v1684_v43 = vpop.permute.xlu1 %543  ;;  %v1765_v11 = vpop.permute.xlu0 %570 }
  0xe2   : > { %vm578_vm9 = vcmp.eq.s32.totalorder %v1691_v48, %v1684_v43  ;;  %v610_v17 = vmax.f32 %v606_v4, %v1777_v14  ;;  %vm587_vm15 = vcmp.eq.s32.totalorder %v1691_v48, %v1765_v11 }
  0xe3   : > { %v1763_v10 = vsel %vm578_vm9, %v496_v58, -1e+30  ;;  %v1823_v30 = vsel %vm587_vm15, %v505_v24, -1e+30  ;;  %v604_v58 = vld [vmem:[%s1649_s21] sm:$0x1] }
  0xe4   : > { %v607_v20 = vmax.f32 %v1751_v6, %v1763_v10  ;;  %v614_v32 = vmax.f32 %v610_v17, %v1818_v29 }
  0xe5   : > { %v1688_v46 = vpop.permute.xlu1 %546 }
  0xe6   : > { %vm579_vm3 = vcmp.eq.s32.totalorder %v1691_v48, %v1688_v46 }
  0xe7   : > { %v1722_v0 = vsel %vm579_vm3, %v497_v55, -1e+30  ;;  %v632_v55 = vshrl.u32 %v522_v44, 7 }
  0xe8   : > { %v608_v7 = vmax.f32 %v1737_v2, %v1722_v0 }
  0xe9   : > { %v1695_v52 = vpop.permute.xlu1 %549 }
  0xea   : > { %vm580_vm10 = vcmp.eq.s32.totalorder %v1691_v48, %v1695_v52  ;;  %v612_v21 = vmax.f32 %v608_v7, %v1783_v16 }
  0xeb   : > { %v1770_v12 = vsel %vm580_vm10, %v498_v60, -1e+30  ;;  %v633_v60 = vsub.s32 0, %v632_v55 }
  0xec   : > { %v609_v22 = vmax.f32 %v605_v15, %v1770_v12  ;;  %v616_v34 = vmax.f32 %v612_v21, %v1823_v30 }
  0xed   : > { %v1724_v1 = vpop.permute.xlu1 %555 }
  0xee   : > { %vm582_vm12 = vcmp.eq.s32.totalorder %v1691_v48, %v1724_v1 }
  0xef   : > { %v1793_v18 = vsel %vm582_vm12, %v500_v5, -1e+30 }
  0xf0   : > { %v611_v27 = vmax.f32 %v607_v20, %v1793_v18 }
  0xf1   : > { %v1772_v13 = vpop.permute.xlu1 %561 }
  0xf2   : > { %vm584_vm13 = vcmp.eq.s32.totalorder %v1691_v48, %v1772_v13 }
  0xf3   : > { %v1798_v19 = vsel %vm584_vm13, %v502_v8, -1e+30 }
  0xf4   : > { %v613_v28 = vmax.f32 %v609_v22, %v1798_v19 }
  0xf5   : > { %v1809_v26 = vpop.permute.xlu1 %567 }
  0xf6   : > { %vm586_vm0 = vcmp.eq.s32.totalorder %v1691_v48, %v1809_v26  ;;  %v617_v37 = vmax.f32 %v613_v28, %v614_v32 }
  0xf7   : > { %v1828_v31 = vsel %vm586_vm0, %v504_v25, -1e+30 }
  0xf8   : > { %v615_v33 = vmax.f32 %v611_v27, %v1828_v31 }
  0xfa   : > { %v618_v47 = vmax.f32 %v615_v33, %v616_v34 }
  0xfc   : > { %v619_v49 = vmax.f32 %v617_v37, %v618_v47 }
  0xfe   : > { %v620_v50 = vrot.slane %v619_v49, 4  ;;  %v806_v51 = vpop.trf.xlu1 }
  0xff   : > { %1198 = vmatprep.mubr.bf16.mxu0 %v806_v51 }
 0x100   : > { %v621_v53 = vmax.f32 %v619_v49, %v620_v50 }
 0x102   : > { %v622_v54 = vrot.slane %v621_v53, 2 }
 0x104   : > { %v623_v56 = vmax.f32 %v621_v53, %v622_v54 }
 0x106   : > { %v624_v57 = vrot.slane %v623_v56, 1 }
 0x108   : > { %v625_v62 = vmax.f32 %v623_v56, %v624_v57 }
 0x10a   : > { %v626_v4 = vmax.f32 %v604_v58, %v625_v62 }
 0x10c   : > { %v627_v5 = vsub.f32 %v604_v58, %v626_v4  ;;  %v634_v7 = vrot.slane %v626_v4, %v633_v60  ;;  %725 = vst [vmem:[%s1649_s21] sm:$0x1] %v626_v4 }
 0x10e   : > { %v628_v8 = vmul.f32 1.442695, %v627_v5  ;;  %v636_v15 = vsub.f32 %v588_v9, %v634_v7  ;;  %v637_v17 = vsub.f32 %v1715_v63, %v634_v7  ;;  %v638_v20 = vsub.f32 %v1751_v6, %v634_v7 }
 0x10f   : > { %v639_v21 = vsub.f32 %v1737_v2, %v634_v7  ;;  %v640_v44 = vsub.f32 %v1742_v3, %v634_v7  ;;  %v641_v22 = vsub.f32 %v1710_v61, %v634_v7  ;;  %v642_v25 = vsub.f32 %v1763_v10, %v634_v7 }
 0x110   : > { %1282 = vpow2.f32 %v628_v8  ;;  %v652_v23 = vmul.f32 1.442695, %v636_v15  ;;  %v654_v24 = vmul.f32 1.442695, %v637_v17  ;;  %v656_v27 = vmul.f32 1.442695, %v638_v20 }
 0x111   : > { %v658_v28 = vmul.f32 1.442695, %v639_v21  ;;  %v643_v32 = vsub.f32 %v1722_v0, %v634_v7  ;;  %v644_v63 = vsub.f32 %v1770_v12, %v634_v7  ;;  %v660_v6 = vmul.f32 1.442695, %v640_v44 }
 0x112   : > { %1284 = vpow2.f32 %v652_v23  ;;  %v646_v2 = vsub.f32 %v1793_v18, %v634_v7  ;;  %v662_v9 = vmul.f32 1.442695, %v641_v22  ;;  %v645_v3 = vsub.f32 %v1777_v14, %v634_v7 }
 0x113   : > { %1286 = vpow2.f32 %v654_v24  ;;  %v664_v61 = vmul.f32 1.442695, %v642_v25  ;;  %v648_v33 = vsub.f32 %v1798_v19, %v634_v7  ;;  %v666_v10 = vmul.f32 1.442695, %v643_v32 }
 0x114   : > { %1288 = vpow2.f32 %v656_v27  ;;  %v649_v34 = vsub.f32 %v1818_v29, %v634_v7  ;;  %v668_v0 = vmul.f32 1.442695, %v644_v63  ;;  %v650_v37 = vsub.f32 %v1828_v31, %v634_v7 }
 0x115   : > { %1290 = vpow2.f32 %v658_v28  ;;  %v672_v12 = vmul.f32 1.442695, %v646_v2  ;;  %v651_v47 = vsub.f32 %v1823_v30, %v634_v7  ;;  %v670_v18 = vmul.f32 1.442695, %v645_v3 }
 0x116   : > { %1292 = vpow2.f32 %v660_v6  ;;  %v676_v49 = vmul.f32 1.442695, %v648_v33  ;;  %v678_v50 = vmul.f32 1.442695, %v649_v34  ;;  %v680_v19 = vmul.f32 1.442695, %v650_v37 }
 0x117   : > { %1294 = vpow2.f32 %v662_v9  ;;  %v647_v51 = vsub.f32 %v1783_v16, %v634_v7  ;;  %v682_v31 = vmul.f32 1.442695, %v651_v47 }
 0x118   : > { %1296 = vpow2.f32 %v664_v61 }
 0x119   : > { %1298 = vpow2.f32 %v666_v10  ;;  %v674_v56 = vmul.f32 1.442695, %v647_v51 }
 0x11a   : > { %1300 = vpow2.f32 %v668_v0 }
 0x11b   : > { %1302 = vpow2.f32 %v672_v12 }
 0x11c   : > { %1304 = vpow2.f32 %v670_v18 }
 0x11d   : > { %v1850_v14 = vpop.eup %1282  ;;  %1306 = vpow2.f32 %v676_v49 }
 0x11e   : > { %v1853_v29 = vrot.slane %v1850_v14, %v633_v60  ;;  %1308 = vpow2.f32 %v678_v50  ;;  %v701_v38 = vmul.f32 %v1850_v14, %v700_v41 }
 0x11f   : > { %v1856_v53 = vpop.eup %1284  ;;  %1310 = vpow2.f32 %v680_v19 }
 0x120   : > { %v1858_v30 = vpop.eup %1286  ;;  %v684_v54 = vsel %vm2080_vm7, %v1856_v53, 0.0  ;;  %1312 = vpow2.f32 %v682_v31  ;;  %vm1104_vm7 = vmpackc.low %vm585_vm14, %vm584_vm13 }
 0x121   : > { %v1864_v55 = vpop.eup %1288  ;;  %v685_v16 = vsel %vm2079_vm2, %v1858_v30, 0.0  ;;  %1314 = vpow2.f32 %v674_v56  ;;  %vm1101_vm2 = vmpackc.low %vm587_vm15, %vm586_vm0 }
 0x122   : > { %v1870_v57 = vpop.eup %1290  ;;  %v702_v58 = vadd.f32 %v685_v16, %v684_v54  ;;  %v686_v60 = vsel %vm574_vm6, %v1864_v55, 0.0 }
 0x123   : > { %v1293_v62 = vpop.eup %1292  ;;  %v687_v7 = vsel %vm575_vm4, %v1870_v57, 0.0  ;;  %v1120_v46 = vpack.c.bf16 %v1870_v57, %v1864_v55  ;;  %v807_v57 = vpop.trf.xlu1 }
 0x124   : > { %v703_v4 = vadd.f32 %v702_v58, %v686_v60  ;;  %v1295_v5 = vpop.eup %1294  ;;  %v688_v20 = vsel %vm576_vm5, %v1293_v62, 0.0  ;;  %v1123_v60 = vpack.c.bf16 %v1858_v30, %v1856_v53 }
 0x125   : > { %v1297_v8 = vpop.eup %1296  ;;  %v689_v23 = vsel %vm577_vm1, %v1295_v5, 0.0  ;;  %v1117_v59 = vpack.c.bf16 %v1295_v5, %v1293_v62 }
 0x126   : > { %v704_v15 = vadd.f32 %v703_v4, %v687_v7  ;;  %v1299_v17 = vpop.eup %1298  ;;  %v690_v32 = vsel %vm578_vm9, %v1297_v8, 0.0 }
 0x127   : > { %v1301_v21 = vpop.eup %1300  ;;  %v691_v3 = vsel %vm579_vm3, %v1299_v17, 0.0  ;;  %v1114_v16 = vpack.c.bf16 %v1299_v17, %v1297_v8 }
 0x128   : > { %v705_v44 = vadd.f32 %v704_v15, %v688_v20  ;;  %v1303_v22 = vpop.eup %1302  ;;  %v692_v34 = vsel %vm580_vm10, %v1301_v21, 0.0 }
 0x129   : > { %v1305_v24 = vpop.eup %1304  ;;  %v694_v25 = vsel %vm582_vm12, %v1303_v22, 0.0 }
 0x12a   : > { %v706_v27 = vadd.f32 %v705_v44, %v689_v23  ;;  %v1307_v28 = vpop.eup %1306  ;;  %v693_v12 = vsel %vm581_vm8, %v1305_v24, 0.0  ;;  %v1111_v54 = vpack.c.bf16 %v1305_v24, %v1301_v21 }
 0x12b   : > { %v1309_v63 = vpop.eup %1308  ;;  %v696_v6 = vsel %vm584_vm13, %v1307_v28, 0.0 }
 0x12c   : > { %v707_v2 = vadd.f32 %v706_v27, %v690_v32  ;;  %v1311_v9 = vpop.eup %1310  ;;  %v1105_v47 = vpack.c.bf16 %v1309_v63, %v1307_v28  ;;  %v697_v31 = vsel %vm585_vm14, %v1309_v63, 0.0 }
 0x12d   : > { %v1313_v61 = vpop.eup %1312  ;;  %v698_v33 = vsel %vm586_vm0, %v1311_v9, 0.0  ;;  %vm1107_vm0 = vmpackc.low %vm583_vm11, %vm582_vm12 }
 0x12e   : > { %v708_v10 = vadd.f32 %v707_v2, %v691_v3  ;;  %v1102_v0 = vpack.c.bf16 %v1313_v61, %v1311_v9  ;;  %v1315_v18 = vpop.eup %1314  ;;  %v699_v56 = vsel %vm587_vm15, %v1313_v61, 0.0 }
 0x12f   : > { %v695_v50 = vsel %vm583_vm11, %v1315_v18, 0.0  ;;  %v1108_v19 = vpack.c.bf16 %v1315_v18, %v1303_v22 }
 0x130   : > { %v709_v37 = vadd.f32 %v708_v10, %v692_v34  ;;  %1182 = vmatprep.subr.msk.bf16.mxu0 %vm1101_vm2, %v1102_v0 }
 0x131   : > { %1183 = vmatpush3.bf16.msk.msra.mxu0 %vm1101_vm2, %v1102_v0  ;;  %vm1110_vm2 = vmpackc.low %vm581_vm8, %vm580_vm10 }
 0x132   : > { %v710_v49 = vadd.f32 %v709_v37, %v693_v12  ;;  %1184 = vmatprep.subr.msk.bf16.mxu0 %vm1104_vm7, %v1105_v47  ;;  %vm1116_vm8 = vmpackc.low %vm577_vm1, %vm576_vm5  ;;  %vm2088_vm1 = vcmp.eq.s32.totalorder %v1691_v48, %v1676_v39  ;;  %vm2089_vm5 = vcmp.eq.s32.totalorder %v1691_v48, %v1668_v35 }
 0x134   : > { %v711_v26 = vadd.f32 %v710_v49, %v694_v25 }
 0x135   : > { %1185 = vmatpush3.bf16.msk.msra.mxu0 %vm1104_vm7, %v1105_v47  ;;  %vm1113_vm7 = vmpackc.low %vm579_vm3, %vm578_vm9 }
 0x136   : > { %v712_v13 = vadd.f32 %v711_v26, %v695_v50  ;;  %1186 = vmatprep.subr.msk.bf16.mxu0 %vm1107_vm0, %v1108_v19  ;;  %vm1119_vm3 = vmpackc.low %vm575_vm4, %vm574_vm6 }
 0x137   : > { %vm1122_vm9 = vmpackc.low %vm2089_vm5, %vm2088_vm1 }
 0x138   : > { %v713_v51 = vadd.f32 %v712_v13, %v696_v6 }
 0x139   : > { %1187 = vmatpush3.bf16.msk.msra.mxu0 %vm1107_vm0, %v1108_v19 }
 0x13a   : > { %v714_v1 = vadd.f32 %v713_v51, %v697_v31  ;;  %1188 = vmatprep.subr.msk.bf16.mxu0 %vm1110_vm2, %v1111_v54 }
 0x13c   : > { %v715_v45 = vadd.f32 %v714_v1, %v698_v33 }
 0x13d   : > { %1189 = vmatpush3.bf16.msk.msra.mxu0 %vm1110_vm2, %v1111_v54 }
 0x13e   : > { %v716_v52 = vadd.f32 %v715_v45, %v699_v56  ;;  %1190 = vmatprep.subr.msk.bf16.mxu0 %vm1113_vm7, %v1114_v16 }
 0x140   : > { %v717_v42 = vrot.slane %v716_v52, 4 }
 0x141   : > { %1191 = vmatpush3.bf16.msk.msra.mxu0 %vm1113_vm7, %v1114_v16 }
 0x142   : > { %v718_v11 = vadd.f32 %v717_v42, %v716_v52  ;;  %1192 = vmatprep.subr.msk.bf16.mxu0 %vm1116_vm8, %v1117_v59 }
 0x144   : > { %v719_v43 = vrot.slane %v718_v11, 2 }
 0x145   : > { %1193 = vmatpush3.bf16.msk.msra.mxu0 %vm1116_vm8, %v1117_v59 }
 0x146   : > { %v720_v40 = vadd.f32 %v719_v43, %v718_v11  ;;  %1194 = vmatprep.subr.msk.bf16.mxu0 %vm1119_vm3, %v1120_v46 }
 0x148   : > { %v721_v58 = vrot.slane %v720_v40, 1 }
 0x149   : > { %1195 = vmatpush3.bf16.msk.msra.mxu0 %vm1119_vm3, %v1120_v46 }
 0x14a   : > { %v722_v36 = vadd.f32 %v721_v58, %v720_v40  ;;  %1196 = vmatprep.subr.msk.bf16.mxu0 %vm1122_vm9, %v1123_v60 }
 0x14c   : > { %v723_v55 = vadd.f32 %v722_v36, %v701_v38 }
 0x14d   : > { %1197 = vmatpush3.bf16.msk.msra.mxu0 %vm1122_vm9, %v1123_v60 }
 0x14e   : > { %724 = vst [vmem:[%s1657_s22] sm:$0x1] %v723_v55 }
 0x150   : > { %1199 = vmatmul.mubr.bf16.vlgmr.msra.gmra.mxu0 %v807_v57 }
 0x151   : > { %1329 = shalt.err (!%p1326_p5)
}
 0x152   : > { %s1330_s0 = scalar_lea.hbm %s921_s18, 16  ;;  %s1334_s13 = scalar_lea.hbm %s2077_s6, 32 }
 0x153   : > { %p1331_p6 = scmp.ne.s32.totalorder %s921_s18, %s1330_s0  ;;  %p1335_p10 = scmp.lt.s32.totalorder %s921_s18, %s2077_s6 }
 0x154   : > { %p1336_p11 = scmp.lt.s32.totalorder %s1334_s13, %s1330_s0 }
 0x155   : > { %p1332_p7 = pnand %p1331_p6, %p1543_p4 }
 0x156   : > { %p1337_p12 = por %p1336_p11, %p1335_p10 }
 0x157   : > { %p1333_p9 = pneg %p1332_p7 }
 0x159   : > { %p1338_p13 = pnand %p1337_p12, %p1333_p9 }
 0x15b   : > { %1341 = shalt.err (!%p1338_p13)
}
 0x15c   : > { %s2090_s1 = scalar_lea.sflag [#allocation6], %s1973_s24  ;;  %s934_s23 = scalar_lea.hbm %s2078_s7, %s1561_s16 }
 0x15d   : > { %1203 = dma.vmem_to_hbm [thread:$0]  (%p1543_p4), %s924_s25, 16, %s921_s18, %s2090_s1  }
 0x15e   : > { %s936_s22 = sshll.u32 %s1649_s21, 4  ;;  %s1454_s19 = smov [#allocation7]   ;;  %s937_s22 = int_to_ptr.vmem [resolvable:$true] %s936_s22 }
 0x15f   : > { %s1342_s2 = scalar_lea.vmem %s937_s22, 16  ;;  %s1346_s0 = sshll.u32 %s1454_s19, 4  ;;  %s1347_s0 = int_to_ptr.vmem [resolvable:$false] %s1346_s0 }
 0x160   : > { %p1343_p0 = scmp.ne.s32.totalorder %s937_s22, %s1342_s2  ;;  %s1348_s11 = scalar_lea.vmem %s1347_s0, 32 }
 0x161   : > { %p1349_p3 = scmp.lt.s32.totalorder %s937_s22, %s1347_s0  ;;  %p1350_p5 = scmp.lt.s32.totalorder %s1348_s11, %s1342_s2 }
 0x162   : > { %p1344_p1 = pnand %p1343_p0, %p1543_p4 }
 0x163   : > { %p1351_p6 = por %p1350_p5, %p1349_p3 }
 0x164   : > { %p1345_p2 = pneg %p1344_p1 }
 0x166   : > { %p1352_p7 = pnand %p1351_p6, %p1345_p2 }
 0x168   : > { %1355 = shalt.err (!%p1352_p7)
}
 0x169   : > { %s1356_s25 = scalar_lea.hbm %s934_s23, 16  ;;  %s1360_s18 = scalar_lea.hbm %s2078_s7, 32 }
 0x16a   : > { %p1357_p9 = scmp.ne.s32.totalorder %s934_s23, %s1356_s25  ;;  %p1361_p12 = scmp.lt.s32.totalorder %s934_s23, %s2078_s7 }
 0x16b   : > { %p1362_p13 = scmp.lt.s32.totalorder %s1360_s18, %s1356_s25 }
 0x16c   : > { %p1358_p10 = pnand %p1357_p9, %p1543_p4 }
 0x16d   : > { %p1363_p0 = por %p1362_p13, %p1361_p12 }
 0x16e   : > { %p1359_p11 = pneg %p1358_p10 }
 0x170   : > { %p1364_p1 = pnand %p1363_p0, %p1359_p11 }
 0x172   : > { %1367 = shalt.err (!%p1364_p1)
}
 0x173   : > { %s2091_s9 = scalar_lea.sflag [#allocation6], %s1973_s24  ;;  %s1085_s20 = sshll.u32 %s1646_s17, 5  ;;  %v875_v35 = vmul.f32 0.0, %v1853_v29 }
 0x174   : > { %1204 = dma.vmem_to_hbm [thread:$0]  (%p1543_p4), %s937_s22, 16, %s934_s23, %s2091_s9  }
 0x175   : > { %s336_s2 = scalar_lea.vmem [#allocation3], %s1085_s20  ;;  %s1132_s19 = sshll.u32 %s1440_s29, 9 }
 0x176   : > { %s907_s0 = sshll.u32 %s336_s2, 4  ;;  %s2020_s23 = scalar_lea.hbm %s2076_s5, %s1132_s19  ;;  %s2022_s0 = int_to_ptr.vmem [resolvable:$true] %s907_s0 }
 0x177   : > { %s886_s22 = scalar_lea.sflag [#allocation4], %s1646_s17  ;;  %s1368_s29 = scalar_lea.vmem %s2022_s0, 512 }
 0x178   : > { %p1369_p2 = scmp.ne.s32.totalorder %s2022_s0, %s1368_s29  ;;  %s1455_s25 = smov [#allocation3]  }
 0x179   : > { %s1372_s16 = sshll.u32 %s1455_s25, 4  ;;  %s1373_s16 = int_to_ptr.vmem [resolvable:$false] %s1372_s16 }
 0x17a   : > { %p1370_p3 = pnand %p1369_p2, %p1543_p4  ;;  %s1374_s21 = scalar_lea.vmem %s1373_s16, 1024 }
 0x17b   : > { %p1375_p6 = scmp.lt.s32.totalorder %s2022_s0, %s1373_s16  ;;  %p1376_p7 = scmp.lt.s32.totalorder %s1374_s21, %s1368_s29 }
 0x17c   : > { %p1371_p5 = pneg %p1370_p3 }
 0x17d   : > { %p1377_p9 = por %p1376_p7, %p1375_p6 }
 0x17f   : > { %p1378_p10 = pnand %p1377_p9, %p1371_p5 }
 0x210   : > { %v1200_v39 = vpop.f32.mrf.mxu0 }
 0x211   : > { %v879_v48 = vadd.f32 %v1200_v39, %v875_v35 }
 0x212   : > { %v848_v14 = vpop.f32.mrf.mxu0 }
 0x213   : > { %883 = vst [vmem:[%s336_s2 + $0x10] sm:$0xff] %v879_v48  ;;  %v877_v53 = vadd.f32 %v875_v35, %v848_v14 }
 0x214   : > { %v1201_v30 = vpop.f32.mrf.mxu0 }
 0x215   : > { %881 = vst [vmem:[%s336_s2] sm:$0xff] %v877_v53  ;;  %v880_v62 = vadd.f32 %v1201_v30, %v875_v35 }
 0x216   : > { %v851_v4 = vpop.f32.mrf.mxu0 }
 0x217   : > { %884 = vst [vmem:[%s336_s2 + $0x18] sm:$0xff] %v880_v62  ;;  %v878_v29 = vadd.f32 %v875_v35, %v851_v4 }
 0x219   : > { %882 = vst [vmem:[%s336_s2 + $0x8] sm:$0xff] %v878_v29 }
 0x21a   : > { %1381 = shalt.err (!%p1378_p10)
}
 0x21b   : > { %s1382_s18 = scalar_lea.hbm %s2020_s23, 512  ;;  %s1386_s9 = scalar_lea.hbm %s2076_s5, 1024 }
 0x21c   : > { %p1383_p11 = scmp.ne.s32.totalorder %s2020_s23, %s1382_s18  ;;  %p1387_p0 = scmp.lt.s32.totalorder %s2020_s23, %s2076_s5 }
 0x21d   : > { %p1388_p1 = scmp.lt.s32.totalorder %s1386_s9, %s1382_s18 }
 0x21e   : > { %p1384_p12 = pnand %p1383_p11, %p1543_p4 }
 0x21f   : > { %p1389_p2 = por %p1388_p1, %p1387_p0 }
 0x220   : > { %p1385_p13 = pneg %p1384_p12 }
 0x222   : > { %p1390_p3 = pnand %p1389_p2, %p1385_p13 }
 0x224   : > { %1393 = shalt.err (!%p1390_p3)
}
 0x225   : > { %s1456_s19 = smov 128   ;;  %s1457_s24 = smov 8  }
 0x226   : > { %1202 = dma.vmem_to_hbm [thread:$0]  (%p1543_p4), %s2022_s0, 512, %s2020_s23, %s886_s22, %s1456_s19, %s1456_s19, %s1457_s24  }
 0x227 PF: > { %p1218_p5 = scmp.ge.s32.totalorder %s1448_s8, 2  ;;  %s948_s11 = sand.u32 1, %s1428_s26  }
 0x228   : > { %s949_s29 = scalar_lea.sflag [#allocation4], %s948_s11 }
 0x229   : > { %p1209_p6 = pnand %p1218_p5, %p1552_p8 }
 0x22b   : > { %p1210_p7 = pneg %p1209_p6 }
 0x22d   : > { %1419 = dma.done.wait (%p1210_p7), %s949_s29, 512  }
 0x22e   : > { %1421 = vsyncadd (%p1210_p7), %s949_s29, 4294966784  ;;  %s2092_s25 = sadd.s32 4294967294, %s1448_s8  }
 0x22f   : > { %s957_s16 = sand.u32 1, %s2092_s25  }
 0x230   : > { %s958_s21 = scalar_lea.sflag [#allocation6], %s957_s16 }
 0x231   : > { %1423 = dma.done.wait (%p1210_p7), %s958_s21, 32  }
 0x232   : > { %1425 = vsyncadd (%p1210_p7), %s958_s21, 4294967264  ;;  %s25_s8 = sadd.s32 1, %s1448_s8   ;;  %s2093_s26 = smov %s1432_s27 }
 0x233   : > { %p22_p4 = scmp.ge.s32.totalorder %s25_s8, 4   ;;  %s2094_s27 = smov %s1436_s28 }
 0x234   : > { %s2095_s28 = smov %s1558_s15  ;;  %s2096_s29 = smov %s1444_s30 }
 0x235   : > { %s2097_s30 = smov %s2099_s10  ;;  %24 = sbr.rel (!%p22_p4) target bundleno = 10 (0xa), region = 117 }
 0x23a   :  { %970 = vsyncpa [#allocation4], 1 }
 0x23b   :  { %972 = vsyncpa [#allocation4 + $0x1], 1 }
 0x23c   :  { %973 = vsyncpa [#allocation6], 1 }
 0x23d   :  { %975 = vsyncpa [#allocation6 + $0x1], 1 }

</bundles_post_ra>
